<compile_context>
chip_gen: v7x
topology: tpu7x:2x2x1
jax: 0.10.0
libtpu: 0.0.40
codegen_flags: <defaults>
</compile_context>

<pallas_src>
import functools

import jax
import jax.numpy as jnp
from jax.experimental import pallas as pl
from jax.experimental.pallas import tpu as pltpu

H_DIM = 400
IN_DIM = 2
OUT_DIM = 2
OUT_PAD = 128          # lane-dense padded output width


def _round_up(x, m):
    return ((x + m - 1) // m) * m


def generator_kernel(z_ref,
                     w1_ref, b1_ref,
                     w2_ref, b2_ref,
                     w3_ref, b3_ref,
                     w4_ref, b4_ref,
                     out_ref):
    z = z_ref[...]          # [TB, 2]        f32
    w1 = w1_ref[...]        # [2, H]         f32

    # Layer 1: Linear(2, H) + ReLU.  K=2 would leave the systolic array almost
    # empty, so do the rank-2 outer product on the VPU instead.
    h = z[:, 0:1] * w1[0:1, :] + z[:, 1:2] * w1[1:2, :] + b1_ref[...]
    h = jnp.maximum(h, 0.0)

    # Layer 2: Linear(H, H) + ReLU.  bf16 operands on the MXU, f32 accumulation.
    h = jnp.dot(h.astype(jnp.bfloat16), w2_ref[...],
                preferred_element_type=jnp.float32)
    h = jnp.maximum(h + b2_ref[...], 0.0)

    # Layer 3: Linear(H, H) + ReLU.
    h = jnp.dot(h.astype(jnp.bfloat16), w3_ref[...],
                preferred_element_type=jnp.float32)
    h = jnp.maximum(h + b3_ref[...], 0.0)

    # Layer 4: Linear(H, 128-padded-out).  bf16 operands; lane-dense (TB, 128)
    # store (columns 2..127 of w4/b4 are zero and get sliced off outside).
    o = jnp.dot(h.astype(jnp.bfloat16), w4_ref[...],
                preferred_element_type=jnp.float32)
    out_ref[...] = (o + b4_ref[...]).astype(out_ref.dtype)


def generator_forward(z, params, *, tb=1024):
    """z: [B, 2] float32. params: dict of (w_t, b) with w_t already [in, out]."""
    B = z.shape[0]

    # Adaptive tiling: pick num_tiles first, then the smallest 8-multiple tile
    # covering B/num_tiles, so batch padding stays minimal.  Force >= 2 tiles
    # whenever the batch allows it so v7x's two TensorCores both get work.
    num_tiles = max(1, pl.cdiv(B, tb))
    if num_tiles < 2 and B >= 16:
        num_tiles = 2
    TB = _round_up(pl.cdiv(B, num_tiles), 8)
    B_pad = num_tiles * TB
    if B_pad != B:
        z = jnp.pad(z, ((0, B_pad - B), (0, 0)))

    w1, b1 = params["w1"], params["b1"]
    w2 = params["w2"].astype(jnp.bfloat16)   # dominant HBM bytes -> bf16
    b2 = params["b2"]
    w3 = params["w3"].astype(jnp.bfloat16)
    b3 = params["b3"]
    # Zero-pad the tiny final layer to 128 output lanes (lane-dense stores,
    # full MXU lane usage); bf16 operands like the other MXU layers.
    w4_pad = jnp.pad(params["w4"],
                     ((0, 0), (0, OUT_PAD - OUT_DIM))).astype(jnp.bfloat16)
    b4_pad = jnp.pad(params["b4"], ((0, 0), (0, OUT_PAD - OUT_DIM)))

    # Weights / biases: constant block index -> stay VMEM-resident across grid.
    resident = lambda a: pl.BlockSpec(a.shape, lambda i: (0,) * a.ndim)

    flops = 2 * B_pad * H_DIM * (IN_DIM + H_DIM + H_DIM + OUT_PAD)
    bytes_accessed = (z.size * 4 + B_pad * OUT_PAD * 4
                      + w1.size * 4 + b1.size * 4
                      + w2.size * 2 + b2.size * 4
                      + w3.size * 2 + b3.size * 4
                      + w4_pad.size * 2 + b4_pad.size * 4)

    out = pl.pallas_call(
        generator_kernel,
        out_shape=jax.ShapeDtypeStruct((B_pad, OUT_PAD), jnp.float32),
        grid_spec=pltpu.PrefetchScalarGridSpec(
            num_scalar_prefetch=0,
            grid=(num_tiles,),
            in_specs=[
                pl.BlockSpec((TB, IN_DIM), lambda i: (i, 0)),
                resident(w1), resident(b1),
                resident(w2), resident(b2),
                resident(w3), resident(b3),
                resident(w4_pad), resident(b4_pad),
            ],
            out_specs=pl.BlockSpec((TB, OUT_PAD), lambda i: (i, 0)),
        ),
        compiler_params=pltpu.CompilerParams(
            dimension_semantics=("parallel",),
            vmem_limit_bytes=32 << 20,
        ),
        cost_estimate=pl.CostEstimate(
            flops=flops, transcendentals=0, bytes_accessed=bytes_accessed),
    )(z, w1, b1, w2, b2, w3, b3, w4_pad, b4_pad)
    return out[:B, :OUT_DIM]


def init_params(key):
    """Deterministic init mimicking nn.Linear default: U(-1/sqrt(fan_in), ...).
    Weights stored transposed ([in, out]); biases as [1, out] for broadcasting."""
    dims = [(IN_DIM, H_DIM), (H_DIM, H_DIM), (H_DIM, H_DIM), (H_DIM, OUT_DIM)]
    params = {}
    for i, (fan_in, fan_out) in enumerate(dims, start=1):
        key, kw, kb = jax.random.split(key, 3)
        bound = 1.0 / jnp.sqrt(jnp.float32(fan_in))
        params[f"w{i}"] = jax.random.uniform(
            kw, (fan_in, fan_out), jnp.float32, -bound, bound)
        params[f"b{i}"] = jax.random.uniform(
            kb, (1, fan_out), jnp.float32, -bound, bound)
    return params


def generator_reference(z, params):
    """Reference matching the kernel's numerics: w2/w3/w4 and the activations
    feeding them are bf16-rounded; accumulation in f32 at highest precision."""
    dot = functools.partial(jnp.dot, precision="highest")
    rb = lambda x: x.astype(jnp.bfloat16).astype(jnp.float32)
    h = jnp.maximum(dot(z, params["w1"]) + params["b1"], 0.0)
    h = jnp.maximum(dot(rb(h), rb(params["w2"])) + params["b2"], 0.0)
    h = jnp.maximum(dot(rb(h), rb(params["w3"])) + params["b3"], 0.0)
    return dot(rb(h), rb(params["w4"])) + params["b4"]


if __name__ == "__main__":
    key = jax.random.PRNGKey(0)
    kp, kz = jax.random.split(key)
    params = init_params(kp)

    # B=8 exercises the single-tile latency path; B=40 exercises the adaptive
    # multi-tile (>=2 tiles for v7x) + batch-padding path.
    for B in (8, 40):
        z = jax.random.normal(jax.random.fold_in(kz, B), (B, IN_DIM),
                              jnp.float32)
        out = jax.block_until_ready(generator_forward(z, params))
        ref = generator_reference(z, params)
        assert out.shape == (B, OUT_DIM), out.shape
        assert jnp.allclose(out, ref, atol=2e-3, rtol=2e-3), (
            float(jnp.max(jnp.abs(out - ref))))

    print("KERNEL_OK")
</pallas_src>

<mosaic_0001>
module attributes {stable_mosaic.version = 11 : i64} {
  func.func @generator_kernel(%arg0: i32, %arg1: memref<8x2xf32, #tpu.memory_space<vmem>>, %arg2: memref<2x400xf32, #tpu.memory_space<vmem>>, %arg3: memref<1x400xf32, #tpu.memory_space<vmem>>, %arg4: memref<400x400xbf16, #tpu.memory_space<vmem>>, %arg5: memref<1x400xf32, #tpu.memory_space<vmem>>, %arg6: memref<400x400xbf16, #tpu.memory_space<vmem>>, %arg7: memref<1x400xf32, #tpu.memory_space<vmem>>, %arg8: memref<400x128xbf16, #tpu.memory_space<vmem>>, %arg9: memref<1x128xf32, #tpu.memory_space<vmem>>, %arg10: memref<8x128xf32, #tpu.memory_space<vmem>>) attributes {dimension_semantics = [#tpu.dimension_semantics<parallel>], iteration_bounds = array<i64: 1>, scalar_prefetch = 0 : i64, scratch_operands = 0 : i64, tpu.core_type = #tpu.core_type<tc>, window_params = [{transform_indices = @transform_0, window_bounds = array<i64: 8, 2>}, {pipeline_mode = #tpu.pipeline_mode<synchronous>, transform_indices = @transform_1, window_bounds = array<i64: 2, 400>}, {pipeline_mode = #tpu.pipeline_mode<synchronous>, transform_indices = @transform_2, window_bounds = array<i64: 1, 400>}, {pipeline_mode = #tpu.pipeline_mode<synchronous>, transform_indices = @transform_3, window_bounds = array<i64: 400, 400>}, {pipeline_mode = #tpu.pipeline_mode<synchronous>, transform_indices = @transform_4, window_bounds = array<i64: 1, 400>}, {pipeline_mode = #tpu.pipeline_mode<synchronous>, transform_indices = @transform_5, window_bounds = array<i64: 400, 400>}, {pipeline_mode = #tpu.pipeline_mode<synchronous>, transform_indices = @transform_6, window_bounds = array<i64: 1, 400>}, {pipeline_mode = #tpu.pipeline_mode<synchronous>, transform_indices = @transform_7, window_bounds = array<i64: 400, 128>}, {pipeline_mode = #tpu.pipeline_mode<synchronous>, transform_indices = @transform_8, window_bounds = array<i64: 1, 128>}, {transform_indices = @transform_9, window_bounds = array<i64: 8, 128>}]} {
    %c0 = arith.constant 0 : index
    %c0_0 = arith.constant 0 : index
    %0 = vector.load %arg1[%c0, %c0_0] : memref<8x2xf32, #tpu.memory_space<vmem>>, vector<8x2xf32>
    %c0_1 = arith.constant 0 : index
    %c0_2 = arith.constant 0 : index
    %1 = vector.load %arg2[%c0_1, %c0_2] : memref<2x400xf32, #tpu.memory_space<vmem>>, vector<2x400xf32>
    %2 = vector.extract_strided_slice %0 {offsets = [0, 0], sizes = [8, 1], strides = [1, 1]} : vector<8x2xf32> to vector<8x1xf32>
    %3 = vector.extract_strided_slice %1 {offsets = [0, 0], sizes = [1, 400], strides = [1, 1]} : vector<2x400xf32> to vector<1x400xf32>
    %4 = vector.broadcast %2 : vector<8x1xf32> to vector<8x400xf32>
    %5 = vector.broadcast %3 : vector<1x400xf32> to vector<8x400xf32>
    %6 = arith.mulf %4, %5 : vector<8x400xf32>
    %7 = vector.extract_strided_slice %0 {offsets = [0, 1], sizes = [8, 1], strides = [1, 1]} : vector<8x2xf32> to vector<8x1xf32>
    %8 = vector.extract_strided_slice %1 {offsets = [1, 0], sizes = [1, 400], strides = [1, 1]} : vector<2x400xf32> to vector<1x400xf32>
    %9 = vector.broadcast %7 : vector<8x1xf32> to vector<8x400xf32>
    %10 = vector.broadcast %8 : vector<1x400xf32> to vector<8x400xf32>
    %11 = arith.mulf %9, %10 : vector<8x400xf32>
    %12 = arith.addf %6, %11 : vector<8x400xf32>
    %c0_3 = arith.constant 0 : index
    %c0_4 = arith.constant 0 : index
    %13 = vector.load %arg3[%c0_3, %c0_4] : memref<1x400xf32, #tpu.memory_space<vmem>>, vector<1x400xf32>
    %14 = vector.broadcast %13 : vector<1x400xf32> to vector<8x400xf32>
    %15 = arith.addf %12, %14 : vector<8x400xf32>
    %cst = arith.constant 0.000000e+00 : f32
    %16 = vector.broadcast %cst : f32 to vector<8x400xf32>
    %17 = arith.maximumf %15, %16 : vector<8x400xf32>
    %18 = arith.truncf %17 : vector<8x400xf32> to vector<8x400xbf16>
    %c0_5 = arith.constant 0 : index
    %c0_6 = arith.constant 0 : index
    %19 = vector.load %arg4[%c0_5, %c0_6] : memref<400x400xbf16, #tpu.memory_space<vmem>>, vector<400x400xbf16>
    %cst_7 = arith.constant dense<0.000000e+00> : vector<8x400xf32>
    %20 = tpu.matmul %18, %19, %cst_7 {dimension_numbers = #tpu.dot_dimension_numbers<[1], [0], [0], [1], [0, 0, 1, 1], [], []>} : vector<8x400xbf16>, vector<400x400xbf16>, vector<8x400xf32> -> vector<8x400xf32>
    %c0_8 = arith.constant 0 : index
    %c0_9 = arith.constant 0 : index
    %21 = vector.load %arg5[%c0_8, %c0_9] : memref<1x400xf32, #tpu.memory_space<vmem>>, vector<1x400xf32>
    %22 = vector.broadcast %21 : vector<1x400xf32> to vector<8x400xf32>
    %23 = arith.addf %20, %22 : vector<8x400xf32>
    %cst_10 = arith.constant 0.000000e+00 : f32
    %24 = vector.broadcast %cst_10 : f32 to vector<8x400xf32>
    %25 = arith.maximumf %23, %24 : vector<8x400xf32>
    %26 = arith.truncf %25 : vector<8x400xf32> to vector<8x400xbf16>
    %c0_11 = arith.constant 0 : index
    %c0_12 = arith.constant 0 : index
    %27 = vector.load %arg6[%c0_11, %c0_12] : memref<400x400xbf16, #tpu.memory_space<vmem>>, vector<400x400xbf16>
    %cst_13 = arith.constant dense<0.000000e+00> : vector<8x400xf32>
    %28 = tpu.matmul %26, %27, %cst_13 {dimension_numbers = #tpu.dot_dimension_numbers<[1], [0], [0], [1], [0, 0, 1, 1], [], []>} : vector<8x400xbf16>, vector<400x400xbf16>, vector<8x400xf32> -> vector<8x400xf32>
    %c0_14 = arith.constant 0 : index
    %c0_15 = arith.constant 0 : index
    %29 = vector.load %arg7[%c0_14, %c0_15] : memref<1x400xf32, #tpu.memory_space<vmem>>, vector<1x400xf32>
    %30 = vector.broadcast %29 : vector<1x400xf32> to vector<8x400xf32>
    %31 = arith.addf %28, %30 : vector<8x400xf32>
    %cst_16 = arith.constant 0.000000e+00 : f32
    %32 = vector.broadcast %cst_16 : f32 to vector<8x400xf32>
    %33 = arith.maximumf %31, %32 : vector<8x400xf32>
    %34 = arith.truncf %33 : vector<8x400xf32> to vector<8x400xbf16>
    %c0_17 = arith.constant 0 : index
    %c0_18 = arith.constant 0 : index
    %35 = vector.load %arg8[%c0_17, %c0_18] : memref<400x128xbf16, #tpu.memory_space<vmem>>, vector<400x128xbf16>
    %cst_19 = arith.constant dense<0.000000e+00> : vector<8x128xf32>
    %36 = tpu.matmul %34, %35, %cst_19 {dimension_numbers = #tpu.dot_dimension_numbers<[1], [0], [0], [1], [0, 0, 1, 1], [], []>} : vector<8x400xbf16>, vector<400x128xbf16>, vector<8x128xf32> -> vector<8x128xf32>
    %c0_20 = arith.constant 0 : index
    %c0_21 = arith.constant 0 : index
    %37 = vector.load %arg9[%c0_20, %c0_21] : memref<1x128xf32, #tpu.memory_space<vmem>>, vector<1x128xf32>
    %38 = vector.broadcast %37 : vector<1x128xf32> to vector<8x128xf32>
    %39 = arith.addf %36, %38 : vector<8x128xf32>
    %c0_22 = arith.constant 0 : index
    %c0_23 = arith.constant 0 : index
    %40 = vector.load %arg10[%c0_22, %c0_23] : memref<8x128xf32, #tpu.memory_space<vmem>>, vector<8x128xf32>
    tpu.vector_store %arg10[%c0_22, %c0_23], %39 {strides = array<i32>} : memref<8x128xf32, #tpu.memory_space<vmem>>, vector<8x128xf32>,
    return
  }
  func.func @transform_0(%arg0: i32) -> (i32, i32) {
    %c0_i32 = arith.constant 0 : i32
    %c0_i32_0 = arith.constant 0 : i32
    return %arg0, %c0_i32 : i32, i32
  }
  func.func @transform_1(%arg0: i32) -> (i32, i32) {
    %c0_i32 = arith.constant 0 : i32
    %c0_i32_0 = arith.constant 0 : i32
    %c0_i32_1 = arith.constant 0 : i32
    return %c0_i32, %c0_i32_0 : i32, i32
  }
  func.func @transform_2(%arg0: i32) -> (i32, i32) {
    %c0_i32 = arith.constant 0 : i32
    %c0_i32_0 = arith.constant 0 : i32
    %c0_i32_1 = arith.constant 0 : i32
    return %c0_i32, %c0_i32_0 : i32, i32
  }
  func.func @transform_3(%arg0: i32) -> (i32, i32) {
    %c0_i32 = arith.constant 0 : i32
    %c0_i32_0 = arith.constant 0 : i32
    %c0_i32_1 = arith.constant 0 : i32
    return %c0_i32, %c0_i32_0 : i32, i32
  }
  func.func @transform_4(%arg0: i32) -> (i32, i32) {
    %c0_i32 = arith.constant 0 : i32
    %c0_i32_0 = arith.constant 0 : i32
    %c0_i32_1 = arith.constant 0 : i32
    return %c0_i32, %c0_i32_0 : i32, i32
  }
  func.func @transform_5(%arg0: i32) -> (i32, i32) {
    %c0_i32 = arith.constant 0 : i32
    %c0_i32_0 = arith.constant 0 : i32
    %c0_i32_1 = arith.constant 0 : i32
    return %c0_i32, %c0_i32_0 : i32, i32
  }
  func.func @transform_6(%arg0: i32) -> (i32, i32) {
    %c0_i32 = arith.constant 0 : i32
    %c0_i32_0 = arith.constant 0 : i32
    %c0_i32_1 = arith.constant 0 : i32
    return %c0_i32, %c0_i32_0 : i32, i32
  }
  func.func @transform_7(%arg0: i32) -> (i32, i32) {
    %c0_i32 = arith.constant 0 : i32
    %c0_i32_0 = arith.constant 0 : i32
    %c0_i32_1 = arith.constant 0 : i32
    return %c0_i32, %c0_i32_0 : i32, i32
  }
  func.func @transform_8(%arg0: i32) -> (i32, i32) {
    %c0_i32 = arith.constant 0 : i32
    %c0_i32_0 = arith.constant 0 : i32
    %c0_i32_1 = arith.constant 0 : i32
    return %c0_i32, %c0_i32_0 : i32, i32
  }
  func.func @transform_9(%arg0: i32) -> (i32, i32) {
    %c0_i32 = arith.constant 0 : i32
    %c0_i32_0 = arith.constant 0 : i32
    return %arg0, %c0_i32 : i32, i32
  }
}

</mosaic_0001>

<bundles_post_ra>
// kernel: tpu_custom_call.1
= control target key start
LH: loop header
LB: loop body
LE: loop exit
PB: predicated region body
PF: predicated region fallthrough
CT: control target
= control target key end

     0   :  { %14 = vsyncpa [#allocation3], 0  ;;  %s3042_s0 = inlined_call_operand.vmem [shape: f32[8,2], index: 0, kind: input, shape index: {}]   ;;  %s3043_s1 = inlined_call_operand.vmem [shape: f32[2,400], index: 1, kind: input, shape index: {}]   ;;  %s3044_s2 = inlined_call_operand.vmem [shape: f32[1,400], index: 2, kind: input, shape index: {}]   ;;  %s3045_s3 = inlined_call_operand.hbm [shape: bf16[400,400], index: 3, kind: input, shape index: {}]   ;;  %s3046_s4 = inlined_call_operand.vmem [shape: f32[1,400], index: 4, kind: input, shape index: {}]   ;;  %s3047_s5 = inlined_call_operand.hbm [shape: bf16[400,400], index: 5, kind: input, shape index: {}]   ;;  %s3048_s6 = inlined_call_operand.vmem [shape: f32[1,400], index: 6, kind: input, shape index: {}]   ;;  %s3049_s7 = inlined_call_operand.hbm [shape: bf16[400,128], index: 7, kind: input, shape index: {}]   ;;  %s3050_s8 = inlined_call_operand.vmem [shape: f32[1,128], index: 8, kind: input, shape index: {}]   ;;  %s3051_s9 = inlined_call_operand.hbm [shape: f32[8,128], index: 9, kind: output, shape index: {}]  }
   0x1   :  { %15 = vsyncpa [#allocation6], 0 }
   0x2   :  { %16 = vsyncpa [#allocation4], 0  ;;  %s2815_s30 = smov [#allocation5]   ;;  %s2816_s11 = smov [#allocation2]  }
   0x3   :  { %s42_s10 = sshll.u32 %s2815_s30, 4  ;;  %s28_s12 = sshll.u32 %s2816_s11, 4  ;;  %s43_s10 = int_to_ptr.vmem [resolvable:$true] %s42_s10  ;;  %s2875_s12 = int_to_ptr.vmem [resolvable:$true] %s28_s12 }
   0x4   :  { %s2721_s15 = scalar_lea.hbm %s3047_s5, 12800 }
   0x5   :  { %p2722_p0 = scmp.ne.s32.totalorder %s3047_s5, %s2721_s15  ;;  %p2725_p1 = scmp.lt.u32.totalorder %s2721_s15, %s3047_s5 }
   0x7   :  { %p2727_p2 = pnand %p2725_p1, %p2722_p0 }
   0x9   :  { %2730 = shalt.err (!%p2727_p2)
}
   0xa   :  { %s2731_s20 = scalar_lea.vmem %s43_s10, 12800  ;;  %p2736_p4 = scmp.lt.s32.totalorder %s43_s10, %s43_s10 }
   0xb   :  { %p2732_p3 = scmp.ne.s32.totalorder %s43_s10, %s2731_s20  ;;  %p2737_p5 = scmp.lt.s32.totalorder %s2731_s20, %s2731_s20 }
   0xd   :  { %p2738_p6 = por %p2737_p5, %p2736_p4 }
   0xf   :  { %p2739_p7 = pnand %p2738_p6, %p2732_p3 }
  0x11   :  { %2742 = shalt.err (!%p2739_p7)
}
  0x12   :  { %s2817_s21 = smov 256   ;;  %s2818_s22 = smov 16  }
  0x13   :  { %48 = dma.hbm_to_vmem [thread:$0]  %s3047_s5, 12800, %s43_s10, [#allocation6], %s2817_s21, %s2817_s21, %s2818_s22  }
  0x14   :  { %s2743_s27 = scalar_lea.hbm %s3045_s3, 12800 }
  0x15   :  { %p2744_p8 = scmp.ne.s32.totalorder %s3045_s3, %s2743_s27  ;;  %p2747_p9 = scmp.lt.u32.totalorder %s2743_s27, %s3045_s3 }
  0x17   :  { %p2749_p10 = pnand %p2747_p9, %p2744_p8 }
  0x19   :  { %2752 = shalt.err (!%p2749_p10)
}
  0x1a   :  { %s2753_s13 = scalar_lea.vmem %s2875_s12, 12800  ;;  %p2758_p12 = scmp.lt.s32.totalorder %s2875_s12, %s2875_s12 }
  0x1b   :  { %p2754_p11 = scmp.ne.s32.totalorder %s2875_s12, %s2753_s13  ;;  %p2759_p13 = scmp.lt.s32.totalorder %s2753_s13, %s2753_s13 }
  0x1d   :  { %p2760_p0 = por %p2759_p13, %p2758_p12 }
  0x1f   :  { %p2761_p1 = pnand %p2760_p0, %p2754_p11 }
  0x21   :  { %2764 = shalt.err (!%p2761_p1)
}
  0x22   :  { %34 = dma.hbm_to_vmem [thread:$0]  %s3045_s3, 12800, %s2875_s12, [#allocation3], %s2817_s21, %s2817_s21, %s2818_s22  }
  0x23   :  { %s2819_s14 = smov [#allocation7]   ;;  %s2765_s18 = scalar_lea.hbm %s3049_s7, 3200 }
  0x24   :  { %s56_s15 = sshll.u32 %s2819_s14, 4  ;;  %p2766_p2 = scmp.ne.s32.totalorder %s3049_s7, %s2765_s18  ;;  %s57_s15 = int_to_ptr.vmem [resolvable:$true] %s56_s15 }
  0x25   :  { %p2769_p3 = scmp.lt.u32.totalorder %s2765_s18, %s3049_s7 }
  0x27   :  { %p2771_p4 = pnand %p2769_p3, %p2766_p2 }
  0x29   :  { %2774 = shalt.err (!%p2771_p4)
}
  0x2a   :  { %s2775_s25 = scalar_lea.vmem %s57_s15, 3200  ;;  %p2780_p6 = scmp.lt.s32.totalorder %s57_s15, %s57_s15 }
  0x2b   :  { %p2776_p5 = scmp.ne.s32.totalorder %s57_s15, %s2775_s25  ;;  %p2781_p7 = scmp.lt.s32.totalorder %s2775_s25, %s2775_s25 }
  0x2d   :  { %p2782_p8 = por %p2781_p7, %p2780_p6 }
  0x2f   :  { %p2783_p9 = pnand %p2782_p8, %p2776_p5 }
  0x31   :  { %2786 = shalt.err (!%p2783_p9)
}
  0x32   :  { %s2820_s3 = smov 64   ;;  %s2821_s12 = smov 4  }
  0x33   :  { %62 = dma.hbm_to_vmem [thread:$0]  %s3049_s7, 3200, %s57_s15, [#allocation6], %s2820_s3, %s2820_s3, %s2821_s12  }
  0x34   :  { %2809 = dma.done.wait [#allocation3], 12800  }
  0x35   :  { %2810 = vsyncadd [#allocation3], 4294954496 }
  0x36   :  { %2811 = dma.done.wait [#allocation6], 16000  }
  0x37   :  { %2812 = vsyncadd [#allocation6], 4294951296  ;;  %v2822_v0 = vmov 0   ;;  %v75_v1 = vld [vmem:[%s3042_s0] sm:$0xff]  ;;  %v2396_v2 = vld [vmem:[#allocation2 + $0x4] ss:$16 sps:$4 sm:$0xff]  }
  0x38   :  { %2394 = vset.pattern.permute.xlu0 %v2822_v0  ;;  %v2398_v3 = vld [vmem:[#allocation2 + $0xc] ss:$16 sps:$4 sm:$0xff]   ;;  %v2400_v4 = vld [vmem:[#allocation2] ss:$16 sps:$4 sm:$0xff]   ;;  %v2401_v5 = vld [vmem:[#allocation2 + $0x8] ss:$16 sps:$4 sm:$0xff]   ;;  %831 = vmatprep.subr.bf16.mxu0 %v2396_v2 }
  0x39   :  { %79 = vperm.xlu0 %2394, %v75_v1   ;;  %v2402_v6 = vld [vmem:[#allocation2 + $0x24] ss:$16 sps:$4 sm:$0xff]   ;;  %913 = vmatprep.subr.bf16.mxu1 %v2398_v3  ;;  %v2404_v7 = vld [vmem:[#allocation2 + $0x2c] ss:$16 sps:$4 sm:$0xff]   ;;  %v2823_v8 = vmov 1   ;;  %vm827_vm0 = vcmask 130048  }
  0x3a   :  { %832 = vmatpush1.bf16.msra.mxu0 %v2400_v4  ;;  %914 = vmatpush1.bf16.msra.mxu1 %v2401_v5  ;;  %v2406_v9 = vld [vmem:[#allocation2 + $0x20] ss:$16 sps:$4 sm:$0xff]   ;;  %v2407_v10 = vld [vmem:[#allocation2 + $0x28] ss:$16 sps:$4 sm:$0xff]   ;;  %v2408_v11 = vld [vmem:[#allocation2 + $0x44] ss:$16 sps:$4 sm:$0xff]  }
  0x3b   :  { %833 = vmatprep.subr.bf16.mxu0 %v2402_v6  ;;  %915 = vmatprep.subr.bf16.mxu1 %v2404_v7  ;;  %v2410_v12 = vld [vmem:[#allocation2 + $0x4c] ss:$16 sps:$4 sm:$0xff]   ;;  %v2412_v13 = vld [vmem:[#allocation2 + $0x40] ss:$16 sps:$4 sm:$0xff]   ;;  %v2413_v14 = vld [vmem:[#allocation2 + $0x48] ss:$16 sps:$4 sm:$0xff]   ;;  %v83_v6 = vlaneseq }
  0x3c   :  { %v2414_v15 = vld [vmem:[#allocation2 + $0x64] ss:$16 sps:$4 sm:$0xff]   ;;  %v2416_v16 = vld [vmem:[#allocation2 + $0x6c] ss:$16 sps:$4 sm:$0xff]   ;;  %v2418_v17 = vld [vmem:[#allocation2 + $0x60] ss:$16 sps:$4 sm:$0xff]  }
  0x3d   :  { %2395 = vset.pattern.permute.xlu0 %v2823_v8  ;;  %v2419_v18 = vld [vmem:[#allocation2 + $0x68] ss:$16 sps:$4 sm:$0xff]   ;;  %v2420_v19 = vld [vmem:[#allocation2 + $0x84] ss:$16 sps:$4 sm:$0xff]   ;;  %v2422_v20 = vld [vmem:[#allocation2 + $0x8c] ss:$16 sps:$4 sm:$0xff]  }
  0x3e   :  { %124 = vperm.xlu0 %2395, %v75_v1   ;;  %834 = vmatpush1.bf16.msra.mxu0 %v2406_v9  ;;  %v2424_v21 = vld [vmem:[#allocation2 + $0x80] ss:$16 sps:$4 sm:$0xff]   ;;  %v2425_v22 = vld [vmem:[#allocation2 + $0x88] ss:$16 sps:$4 sm:$0xff]   ;;  %v2426_v23 = vld [vmem:[#allocation2 + $0xa4] ss:$16 sps:$4 sm:$0xff]  }
  0x3f   :  { %916 = vmatpush1.bf16.msra.mxu1 %v2407_v10  ;;  %835 = vmatprep.subr.bf16.mxu0 %v2408_v11  ;;  %v2428_v24 = vld [vmem:[#allocation2 + $0xac] ss:$16 sps:$4 sm:$0xff]   ;;  %v2430_v25 = vld [vmem:[#allocation2 + $0xa0] ss:$16 sps:$4 sm:$0xff]   ;;  %v2431_v26 = vld [vmem:[#allocation2 + $0xa8] ss:$16 sps:$4 sm:$0xff]  }
  0x40   :  { %917 = vmatprep.subr.bf16.mxu1 %v2410_v12  ;;  %v2432_v27 = vld [vmem:[#allocation2 + $0xc4] ss:$16 sps:$4 sm:$0xff]   ;;  %v2434_v28 = vld [vmem:[#allocation2 + $0xcc] ss:$16 sps:$4 sm:$0xff]   ;;  %v2436_v29 = vld [vmem:[#allocation2 + $0xc0] ss:$16 sps:$4 sm:$0xff]  }
  0x41   :  { %v2437_v30 = vld [vmem:[#allocation2 + $0xc8] ss:$16 sps:$4 sm:$0xff]   ;;  %v2438_v31 = vld [vmem:[#allocation2 + $0xe4] ss:$16 sps:$4 sm:$0xff]   ;;  %v2440_v32 = vld [vmem:[#allocation2 + $0xec] ss:$16 sps:$4 sm:$0xff]  }
  0x42   :  { %836 = vmatpush1.bf16.msra.mxu0 %v2412_v13  ;;  %v2442_v33 = vld [vmem:[#allocation2 + $0xe0] ss:$16 sps:$4 sm:$0xff]   ;;  %v2443_v34 = vld [vmem:[#allocation2 + $0xe8] ss:$16 sps:$4 sm:$0xff]   ;;  %v2444_v35 = vld [vmem:[#allocation2 + $0x104] ss:$16 sps:$4 sm:$0xff]  }
  0x43   :  { %918 = vmatpush1.bf16.msra.mxu1 %v2413_v14  ;;  %837 = vmatprep.subr.bf16.mxu0 %v2414_v15  ;;  %v2446_v36 = vld [vmem:[#allocation2 + $0x10c] ss:$16 sps:$4 sm:$0xff]   ;;  %v2448_v37 = vld [vmem:[#allocation2 + $0x100] ss:$16 sps:$4 sm:$0xff]   ;;  %v2449_v38 = vld [vmem:[#allocation2 + $0x108] ss:$16 sps:$4 sm:$0xff]  }
  0x44   :  { %919 = vmatprep.subr.bf16.mxu1 %v2416_v16  ;;  %v2450_v39 = vld [vmem:[#allocation2 + $0x124] ss:$16 sps:$4 sm:$0xff]   ;;  %v2452_v40 = vld [vmem:[#allocation2 + $0x12c] ss:$16 sps:$4 sm:$0xff]   ;;  %v2454_v41 = vld [vmem:[#allocation2 + $0x120] ss:$16 sps:$4 sm:$0xff]  }
  0x45   :  { %v2455_v42 = vld [vmem:[#allocation2 + $0x128] ss:$16 sps:$4 sm:$0xff]   ;;  %v2456_v43 = vld [vmem:[#allocation2 + $0x144] ss:$16 sps:$4 sm:$0xff]   ;;  %v2458_v44 = vld [vmem:[#allocation2 + $0x14c] ss:$16 sps:$4 sm:$0xff]  }
  0x46   :  { %838 = vmatpush1.bf16.msra.mxu0 %v2418_v17  ;;  %v2460_v45 = vld [vmem:[#allocation2 + $0x140] ss:$16 sps:$4 sm:$0xff]   ;;  %v2461_v46 = vld [vmem:[#allocation2 + $0x148] ss:$16 sps:$4 sm:$0xff]   ;;  %v2462_v47 = vld [vmem:[#allocation2 + $0x164] ss:$16 sps:$4 sm:$0xff]  }
  0x47   :  { %920 = vmatpush1.bf16.msra.mxu1 %v2419_v18  ;;  %839 = vmatprep.subr.bf16.mxu0 %v2420_v19  ;;  %v2464_v48 = vld [vmem:[#allocation2 + $0x16c] ss:$16 sps:$4 sm:$0xff]   ;;  %v2466_v49 = vld [vmem:[#allocation2 + $0x160] ss:$16 sps:$4 sm:$0xff]   ;;  %v2467_v50 = vld [vmem:[#allocation2 + $0x168] ss:$16 sps:$4 sm:$0xff]  }
  0x48   :  { %921 = vmatprep.subr.bf16.mxu1 %v2422_v20  ;;  %v2468_v51 = vld [vmem:[#allocation2 + $0x184] ss:$16 sps:$4 sm:$0xff]   ;;  %v2470_v52 = vld [vmem:[#allocation2 + $0x18c] ss:$16 sps:$4 sm:$0xff]   ;;  %v2472_v53 = vld [vmem:[#allocation2 + $0x180] ss:$16 sps:$4 sm:$0xff]  }
  0x49   :  { %v2473_v54 = vld [vmem:[#allocation2 + $0x188] ss:$16 sps:$4 sm:$0xff]   ;;  %v2474_v55 = vld [vmem:[#allocation2 + $0x1a4] ss:$16 sps:$4 sm:$0xff]   ;;  %v2476_v56 = vld [vmem:[#allocation2 + $0x1ac] ss:$16 sps:$4 sm:$0xff]  }
  0x4a   :  { %840 = vmatpush1.bf16.msra.mxu0 %v2424_v21  ;;  %v2478_v57 = vld [vmem:[#allocation2 + $0x1a0] ss:$16 sps:$4 sm:$0xff]   ;;  %v2479_v58 = vld [vmem:[#allocation2 + $0x1a8] ss:$16 sps:$4 sm:$0xff]   ;;  %v2480_v59 = vld [vmem:[#allocation2 + $0x1c4] ss:$16 sps:$4 sm:$0xff]  }
  0x4b   :  { %922 = vmatpush1.bf16.msra.mxu1 %v2425_v22  ;;  %841 = vmatprep.subr.bf16.mxu0 %v2426_v23  ;;  %v2482_v60 = vld [vmem:[#allocation2 + $0x1cc] ss:$16 sps:$4 sm:$0xff]   ;;  %v2484_v61 = vld [vmem:[#allocation2 + $0x1c0] ss:$16 sps:$4 sm:$0xff]   ;;  %v2485_v62 = vld [vmem:[#allocation2 + $0x1c8] ss:$16 sps:$4 sm:$0xff]  }
  0x4c   :  { %923 = vmatprep.subr.bf16.mxu1 %v2428_v24  ;;  %v2486_v63 = vld [vmem:[#allocation2 + $0x1e4] ss:$16 sps:$4 sm:$0xff]   ;;  %v2488_v1 = vld [vmem:[#allocation2 + $0x1ec] ss:$16 sps:$4 sm:$0xff]   ;;  %v2490_v2 = vld [vmem:[#allocation2 + $0x1e0] ss:$16 sps:$4 sm:$0xff]  }
  0x4d   :  { %v2491_v3 = vld [vmem:[#allocation2 + $0x1e8] ss:$16 sps:$4 sm:$0xff]   ;;  %v2494_v4 = vld [vmem:[#allocation2 + $0x204] ss:$16 sps:$4 sm:$0xff]   ;;  %v2497_v5 = vld [vmem:[#allocation2 + $0x20c] ss:$16 sps:$4 sm:$0xff]  }
  0x4e   :  { %842 = vmatpush1.bf16.msra.mxu0 %v2430_v25  ;;  %v2922_v7 = vshrl.u32 %v83_v6, 7  ;;  %v2941_v14 = vld [vmem:[%s3043_s1] sm:$0xff]  ;;  %s2824_s13 = smov [#allocation8]  }
  0x4f   :  { %924 = vmatpush1.bf16.msra.mxu1 %v2431_v26  ;;  %843 = vmatprep.subr.bf16.mxu0 %v2432_v27  ;;  %v2956_v21 = vld [vmem:[%s3044_s2] sm:$0xf]  ;;  %v2521_v6 = vld [vmem:[#allocation2 + $0x28c] ss:$16 sps:$4 sm:$0xff]   ;;  %s2097_s5 = sshll.u32 %s2824_s13, 4  ;;  %s2098_s5 = int_to_ptr.vmem [resolvable:$true] %s2097_s5 }
  0x50   :  { %925 = vmatprep.subr.bf16.mxu1 %v2434_v28  ;;  %v2925_v8 = vsub.s32 0, %v2922_v7  ;;  %v2928_v9 = vsub.s32 2, %v2922_v7  ;;  %v97_v10 = vsub.s32 6, %v2922_v7  ;;  %v2932_v11 = vsub.s32 1, %v2922_v7  ;;  %s2787_s10 = scalar_lea.vmem %s2098_s5, 128  ;;  %p2792_p11 = scmp.lt.s32.totalorder %s2098_s5, %s2098_s5 }
  0x51   :  { %v2935_v12 = vsub.s32 3, %v2922_v7  ;;  %v141_v13 = vsub.s32 7, %v2922_v7  ;;  %p2788_p10 = scmp.ne.s32.totalorder %s2098_s5, %s2787_s10  ;;  %p2793_p12 = scmp.lt.s32.totalorder %s2787_s10, %s2787_s10 }
  0x52   :  { %844 = vmatpush1.bf16.msra.mxu0 %v2436_v29  ;;  %v86_v15 = vrot.slane %v2941_v14, %v2925_v8  ;;  %v90_v16 = vrot.slane %v2941_v14, %v2928_v9  ;;  %v98_v17 = vrot.slane %v2941_v14, %v97_v10  ;;  %v130_v18 = vrot.slane %v2941_v14, %v2932_v11 }
  0x53   :  { %926 = vmatpush1.bf16.msra.mxu1 %v2437_v30  ;;  %845 = vmatprep.subr.bf16.mxu0 %v2438_v31  ;;  %v134_v19 = vrot.slane %v2941_v14, %v2935_v12  ;;  %v142_v20 = vrot.slane %v2941_v14, %v141_v13  ;;  %v188_v29 = vrot.slane %v2956_v21, %v2935_v12  ;;  %v2516_v13 = vld [vmem:[#allocation2 + $0x280] ss:$16 sps:$4 sm:$0xff]   ;;  %p2794_p13 = por %p2793_p12, %p2792_p11 }
  0x54   :  { %927 = vmatprep.subr.bf16.mxu1 %v2440_v32  ;;  %v106_v23 = vrot.slane %v86_v15, %v2925_v8  ;;  %v110_v24 = vrot.slane %v90_v16, %v2925_v8  ;;  %v118_v25 = vrot.slane %v98_v17, %v2925_v8  ;;  %v150_v26 = vrot.slane %v130_v18, %v2932_v11  ;;  %v2519_v15 = vld [vmem:[#allocation2 + $0x288] ss:$16 sps:$4 sm:$0xff]   ;;  %v2527_v17 = vld [vmem:[#allocation2 + $0x2ac] ss:$16 sps:$4 sm:$0xff]  }
  0x55   :  { %v154_v27 = vrot.slane %v134_v19, %v2932_v11  ;;  %v162_v28 = vrot.slane %v142_v20, %v2932_v11  ;;  %v2522_v19 = vld [vmem:[#allocation2 + $0x2a0] ss:$16 sps:$4 sm:$0xff]   ;;  %v2525_v20 = vld [vmem:[#allocation2 + $0x2a8] ss:$16 sps:$4 sm:$0xff]   ;;  %p2795_p0 = pnand %p2794_p13, %p2788_p10 }
  0x56   :  { %846 = vmatpush1.bf16.msra.mxu0 %v2442_v33  ;;  %v180_v33 = vrot.slane %v2956_v21, %v2932_v11 }
  0x57   :  { %928 = vmatpush1.bf16.msra.mxu1 %v2443_v34  ;;  %847 = vmatprep.subr.bf16.mxu0 %v2444_v35  ;;  %v176_v34 = vrot.slane %v2956_v21, %v2925_v8 }
  0x58   :  { %929 = vmatprep.subr.bf16.mxu1 %v2446_v36 }
  0x5a   :  { %848 = vmatpush1.bf16.msra.mxu0 %v2448_v37 }
  0x5b   :  { %930 = vmatpush1.bf16.msra.mxu1 %v2449_v38  ;;  %849 = vmatprep.subr.bf16.mxu0 %v2450_v39 }
  0x5c   :  { %931 = vmatprep.subr.bf16.mxu1 %v2452_v40 }
  0x5e   :  { %850 = vmatpush1.bf16.msra.mxu0 %v2454_v41 }
  0x5f   :  { %932 = vmatpush1.bf16.msra.mxu1 %v2455_v42  ;;  %851 = vmatprep.subr.bf16.mxu0 %v2456_v43 }
  0x60   :  { %933 = vmatprep.subr.bf16.mxu1 %v2458_v44 }
  0x62   :  { %852 = vmatpush1.bf16.msra.mxu0 %v2460_v45 }
  0x63   :  { %934 = vmatpush1.bf16.msra.mxu1 %v2461_v46  ;;  %853 = vmatprep.subr.bf16.mxu0 %v2462_v47 }
  0x64   :  { %935 = vmatprep.subr.bf16.mxu1 %v2464_v48 }
  0x66   :  { %854 = vmatpush1.bf16.msra.mxu0 %v2466_v49  ;;  %v2492_v49 = vld [vmem:[#allocation2 + $0x200] ss:$16 sps:$4 sm:$0xff]  }
  0x67   :  { %936 = vmatpush1.bf16.msra.mxu1 %v2467_v50  ;;  %855 = vmatprep.subr.bf16.mxu0 %v2468_v51  ;;  %v2495_v50 = vld [vmem:[#allocation2 + $0x208] ss:$16 sps:$4 sm:$0xff]  }
  0x68   :  { %937 = vmatprep.subr.bf16.mxu1 %v2470_v52  ;;  %v2500_v52 = vld [vmem:[#allocation2 + $0x224] ss:$16 sps:$4 sm:$0xff]  }
  0x6a   :  { %856 = vmatpush1.bf16.msra.mxu0 %v2472_v53  ;;  %v2503_v53 = vld [vmem:[#allocation2 + $0x22c] ss:$16 sps:$4 sm:$0xff]  }
  0x6b   :  { %938 = vmatpush1.bf16.msra.mxu1 %v2473_v54  ;;  %857 = vmatprep.subr.bf16.mxu0 %v2474_v55  ;;  %v2498_v55 = vld [vmem:[#allocation2 + $0x220] ss:$16 sps:$4 sm:$0xff]  }
  0x6c   :  { %939 = vmatprep.subr.bf16.mxu1 %v2476_v56  ;;  %v2501_v56 = vld [vmem:[#allocation2 + $0x228] ss:$16 sps:$4 sm:$0xff]  }
  0x6e   :  { %858 = vmatpush1.bf16.msra.mxu0 %v2478_v57  ;;  %v2506_v57 = vld [vmem:[#allocation2 + $0x244] ss:$16 sps:$4 sm:$0xff]  }
  0x6f   :  { %940 = vmatpush1.bf16.msra.mxu1 %v2479_v58  ;;  %859 = vmatprep.subr.bf16.mxu0 %v2480_v59  ;;  %v2509_v58 = vld [vmem:[#allocation2 + $0x24c] ss:$16 sps:$4 sm:$0xff]   ;;  %v2504_v59 = vld [vmem:[#allocation2 + $0x240] ss:$16 sps:$4 sm:$0xff]  }
  0x70   :  { %941 = vmatprep.subr.bf16.mxu1 %v2482_v60  ;;  %v2507_v60 = vld [vmem:[#allocation2 + $0x248] ss:$16 sps:$4 sm:$0xff]  }
  0x72   :  { %860 = vmatpush1.bf16.msra.mxu0 %v2484_v61  ;;  %v137_v61 = vsub.s32 5, %v2922_v7 }
  0x73   :  { %942 = vmatpush1.bf16.msra.mxu1 %v2485_v62  ;;  %861 = vmatprep.subr.bf16.mxu0 %v2486_v63  ;;  %v2512_v62 = vld [vmem:[#allocation2 + $0x264] ss:$16 sps:$4 sm:$0xff]   ;;  %v2515_v63 = vld [vmem:[#allocation2 + $0x26c] ss:$16 sps:$4 sm:$0xff]  }
  0x74   :  { %943 = vmatprep.subr.bf16.mxu1 %v2488_v1  ;;  %v93_v1 = vsub.s32 4, %v2922_v7  ;;  %v2524_v7 = vld [vmem:[#allocation2 + $0x2a4] ss:$16 sps:$4 sm:$0xff]  }
  0x76   :  { %862 = vmatpush1.bf16.msra.mxu0 %v2490_v2  ;;  %v2510_v2 = vld [vmem:[#allocation2 + $0x260] ss:$16 sps:$4 sm:$0xff]   ;;  %v94_v10 = vrot.slane %v2941_v14, %v93_v1  ;;  %v2587_v1 = vld [vmem:[#allocation5 + $0xcc] ss:$16 sps:$4 sm:$0xff]  }
  0x77   :  { %944 = vmatpush1.bf16.msra.mxu1 %v2491_v3  ;;  %872 = vmatprep.subr.bf16.mxu0 %v2494_v4  ;;  %v2513_v3 = vld [vmem:[#allocation2 + $0x268] ss:$16 sps:$4 sm:$0xff]   ;;  %v138_v4 = vrot.slane %v2941_v14, %v137_v61  ;;  %v2530_v14 = vld [vmem:[#allocation2 + $0x2c4] ss:$16 sps:$4 sm:$0xff]   ;;  %v2576_v61 = vld [vmem:[#allocation5 + $0xa0] ss:$16 sps:$4 sm:$0xff]  }
  0x78   :  { %954 = vmatprep.subr.bf16.mxu1 %v2497_v5  ;;  %v2518_v5 = vld [vmem:[#allocation2 + $0x284] ss:$16 sps:$4 sm:$0xff]   ;;  %v114_v18 = vrot.slane %v94_v10, %v2925_v8  ;;  %v2591_v10 = vld [vmem:[#allocation5 + $0xe8] ss:$16 sps:$4 sm:$0xff]  }
  0x79   :  { %v158_v16 = vrot.slane %v138_v4, %v2932_v11  ;;  %v2590_v4 = vld [vmem:[#allocation5 + $0xe4] ss:$16 sps:$4 sm:$0xff]  }
  0xb8   :  { %v2958_v22 = vpop.permute.xlu0 %79 }
  0xb9   :  { %v119_v30 = vmul.f32 %v106_v23, %v2958_v22  ;;  %v120_v31 = vmul.f32 %v110_v24, %v2958_v22  ;;  %v122_v35 = vmul.f32 %v118_v25, %v2958_v22  ;;  %v2533_v24 = vld [vmem:[#allocation2 + $0x2cc] ss:$16 sps:$4 sm:$0xff]   ;;  %v121_v25 = vmul.f32 %v114_v18, %v2958_v22  ;;  %v2542_v22 = vld [vmem:[#allocation2 + $0x304] ss:$16 sps:$4 sm:$0xff]  }
  0xba   :  { %v2605_v18 = vld [vmem:[#allocation5 + $0x12c] ss:$16 sps:$4 sm:$0xff]  }
  0xbd   :  { %v2970_v32 = vpop.permute.xlu0 %124 }
  0xbe   :  { %v163_v36 = vmul.f32 %v150_v26, %v2970_v32  ;;  %v164_v37 = vmul.f32 %v154_v27, %v2970_v32  ;;  %v166_v38 = vmul.f32 %v162_v28, %v2970_v32  ;;  %v165_v23 = vmul.f32 %v158_v16, %v2970_v32  ;;  %v2528_v26 = vld [vmem:[#allocation2 + $0x2c0] ss:$16 sps:$4 sm:$0xff]   ;;  %v2531_v27 = vld [vmem:[#allocation2 + $0x2c8] ss:$16 sps:$4 sm:$0xff]  }
  0xbf   :  { %v184_v28 = vrot.slane %v2956_v21, %v2928_v9  ;;  %v2534_v32 = vld [vmem:[#allocation2 + $0x2e0] ss:$16 sps:$4 sm:$0xff]  }
  0xc0   :  { %v167_v39 = vadd.f32 %v163_v36, %v119_v30  ;;  %v170_v40 = vadd.f32 %v166_v38, %v122_v35  ;;  %v168_v41 = vadd.f32 %v164_v37, %v120_v31  ;;  %v2536_v30 = vld [vmem:[#allocation2 + $0x2e4] ss:$16 sps:$4 sm:$0xff]   ;;  %v2539_v31 = vld [vmem:[#allocation2 + $0x2ec] ss:$16 sps:$4 sm:$0xff]   ;;  %v2540_v36 = vld [vmem:[#allocation2 + $0x300] ss:$16 sps:$4 sm:$0xff]  }
  0xc1   :  { %v2545_v35 = vld [vmem:[#allocation2 + $0x30c] ss:$16 sps:$4 sm:$0xff]   ;;  %v2543_v37 = vld [vmem:[#allocation2 + $0x308] ss:$16 sps:$4 sm:$0xff]   ;;  %v2548_v38 = vld [vmem:[#allocation5 + $0x4] ss:$16 sps:$4 sm:$0xff]  }
  0xc2   :  { %v196_v42 = vadd.f32 %v188_v29, %v170_v40  ;;  %v194_v43 = vadd.f32 %v180_v33, %v168_v41  ;;  %v193_v44 = vadd.f32 %v176_v34, %v167_v39  ;;  %v169_v29 = vadd.f32 %v165_v23, %v121_v25  ;;  %v2537_v33 = vld [vmem:[#allocation2 + $0x2e8] ss:$16 sps:$4 sm:$0xff]   ;;  %v2551_v39 = vld [vmem:[#allocation5 + $0xc] ss:$16 sps:$4 sm:$0xff]   ;;  %v2546_v40 = vld [vmem:[#allocation5] ss:$16 sps:$4 sm:$0xff]  }
  0xc3   :  { %v2549_v41 = vld [vmem:[#allocation5 + $0x8] ss:$16 sps:$4 sm:$0xff]   ;;  %v2594_v16 = vld [vmem:[#allocation5 + $0x100] ss:$16 sps:$4 sm:$0xff]   ;;  %v2608_v23 = vld [vmem:[#allocation5 + $0x144] ss:$16 sps:$4 sm:$0xff]  }
  0xc4   :  { %v198_v45 = vmax.f32 %v194_v43, 0.0  ;;  %v197_v46 = vmax.f32 %v193_v44, 0.0  ;;  %v200_v47 = vmax.f32 %v196_v42, 0.0  ;;  %v195_v34 = vadd.f32 %v184_v28, %v169_v29  ;;  %v2554_v43 = vld [vmem:[#allocation5 + $0x24] ss:$16 sps:$4 sm:$0xff]  }
  0xc5   :  { %v2557_v44 = vld [vmem:[#allocation5 + $0x2c] ss:$16 sps:$4 sm:$0xff]   ;;  %v2609_v25 = vld [vmem:[#allocation5 + $0x148] ss:$16 sps:$4 sm:$0xff]   ;;  %v2612_v28 = vld [vmem:[#allocation5 + $0x160] ss:$16 sps:$4 sm:$0xff]  }
  0xc6   :  { %v202_v48 = vpack.c.bf16 %v198_v45, %v198_v45  ;;  %v201_v51 = vpack.c.bf16 %v197_v46, %v197_v46  ;;  %v204_v54 = vpack.c.bf16 %v200_v47, %v200_v47  ;;  %v199_v21 = vmax.f32 %v195_v34, 0.0  ;;  %v2552_v45 = vld [vmem:[#allocation5 + $0x20] ss:$16 sps:$4 sm:$0xff]   ;;  %v2555_v46 = vld [vmem:[#allocation5 + $0x28] ss:$16 sps:$4 sm:$0xff]  }
  0xc7   :  { %v2560_v47 = vld [vmem:[#allocation5 + $0x44] ss:$16 sps:$4 sm:$0xff]   ;;  %v2615_v29 = vld [vmem:[#allocation5 + $0x168] ss:$16 sps:$4 sm:$0xff]  }
  0xc8   :  { %863 = vmatprep.mubr.bf16.mxu0 %v202_v48  ;;  %945 = vmatprep.mubr.bf16.mxu1 %v202_v48  ;;  %v203_v42 = vpack.c.bf16 %v199_v21, %v199_v21  ;;  %v2563_v48 = vld [vmem:[#allocation5 + $0x4c] ss:$16 sps:$4 sm:$0xff]   ;;  %v2626_v34 = vld [vmem:[#allocation5 + $0x1a4] ss:$16 sps:$4 sm:$0xff]  }
  0xc9   :  { %864 = vmatmul.mubr.bf16.vlgmr.msra.gmra.mrb[0].mxu0 %v201_v51  ;;  %946 = vmatmul.mubr.bf16.vlgmr.msra.gmra.mrb[0].mxu1 %v201_v51  ;;  %v2566_v51 = vld [vmem:[#allocation5 + $0x64] ss:$16 sps:$4 sm:$0xff]   ;;  %v2635_v21 = vld [vmem:[#allocation5 + $0x1cc] ss:$16 sps:$4 sm:$0xff]  }
  0xca   :  { %873 = vmatpush1.bf16.msra.mxu0 %v2492_v49  ;;  %955 = vmatpush1.bf16.msra.mxu1 %v2495_v50  ;;  %v2558_v49 = vld [vmem:[#allocation5 + $0x40] ss:$16 sps:$4 sm:$0xff]   ;;  %v2561_v50 = vld [vmem:[#allocation5 + $0x48] ss:$16 sps:$4 sm:$0xff]  }
  0xcb   :  { %2207 = vmatprep.mubr.msk.bf16.mxu0 %vm827_vm0, %v204_v54  ;;  %2208 = vmatprep.mubr.msk.bf16.mxu1 %vm827_vm0, %v204_v54  ;;  %v2567_v54 = vld [vmem:[#allocation5 + $0x68] ss:$16 sps:$4 sm:$0xff]  }
  0xcc   :  { %874 = vmatprep.subr.bf16.mxu0 %v2500_v52  ;;  %956 = vmatprep.subr.bf16.mxu1 %v2503_v53  ;;  %v2569_v52 = vld [vmem:[#allocation5 + $0x6c] ss:$16 sps:$4 sm:$0xff]   ;;  %v2564_v53 = vld [vmem:[#allocation5 + $0x60] ss:$16 sps:$4 sm:$0xff]  }
  0xce   :  { %875 = vmatpush1.bf16.msra.mxu0 %v2498_v55  ;;  %957 = vmatpush1.bf16.msra.mxu1 %v2501_v56  ;;  %v2572_v55 = vld [vmem:[#allocation5 + $0x84] ss:$16 sps:$4 sm:$0xff]   ;;  %v2575_v56 = vld [vmem:[#allocation5 + $0x8c] ss:$16 sps:$4 sm:$0xff]  }
  0xcf   :  { %876 = vmatprep.subr.bf16.mxu0 %v2506_v57  ;;  %958 = vmatprep.subr.bf16.mxu1 %v2509_v58  ;;  %v2570_v57 = vld [vmem:[#allocation5 + $0x80] ss:$16 sps:$4 sm:$0xff]   ;;  %v2573_v58 = vld [vmem:[#allocation5 + $0x88] ss:$16 sps:$4 sm:$0xff]  }
  0xd2   :  { %877 = vmatpush1.bf16.msra.mxu0 %v2504_v59  ;;  %959 = vmatpush1.bf16.msra.mxu1 %v2507_v60  ;;  %v2578_v59 = vld [vmem:[#allocation5 + $0xa4] ss:$16 sps:$4 sm:$0xff]   ;;  %v2581_v60 = vld [vmem:[#allocation5 + $0xac] ss:$16 sps:$4 sm:$0xff]  }
  0xd3   :  { %878 = vmatprep.subr.bf16.mxu0 %v2512_v62  ;;  %960 = vmatprep.subr.bf16.mxu1 %v2515_v63  ;;  %v2579_v62 = vld [vmem:[#allocation5 + $0xa8] ss:$16 sps:$4 sm:$0xff]   ;;  %v2584_v63 = vld [vmem:[#allocation5 + $0xc4] ss:$16 sps:$4 sm:$0xff]  }
  0xd6   :  { %879 = vmatpush1.bf16.msra.mxu0 %v2510_v2  ;;  %961 = vmatpush1.bf16.msra.mxu1 %v2513_v3  ;;  %v2582_v2 = vld [vmem:[#allocation5 + $0xc0] ss:$16 sps:$4 sm:$0xff]   ;;  %v2585_v3 = vld [vmem:[#allocation5 + $0xc8] ss:$16 sps:$4 sm:$0xff]  }
  0xd7   :  { %880 = vmatprep.subr.bf16.mxu0 %v2518_v5  ;;  %962 = vmatprep.subr.bf16.mxu1 %v2521_v6  ;;  %v2593_v5 = vld [vmem:[#allocation5 + $0xec] ss:$16 sps:$4 sm:$0xff]   ;;  %v2588_v6 = vld [vmem:[#allocation5 + $0xe0] ss:$16 sps:$4 sm:$0xff]  }
  0xda   :  { %881 = vmatpush1.bf16.msra.mxu0 %v2516_v13  ;;  %963 = vmatpush1.bf16.msra.mxu1 %v2519_v15  ;;  %v2596_v13 = vld [vmem:[#allocation5 + $0x104] ss:$16 sps:$4 sm:$0xff]   ;;  %v2599_v15 = vld [vmem:[#allocation5 + $0x10c] ss:$16 sps:$4 sm:$0xff]  }
  0xdb   :  { %882 = vmatprep.subr.bf16.mxu0 %v2524_v7  ;;  %964 = vmatprep.subr.bf16.mxu1 %v2527_v17  ;;  %v2597_v7 = vld [vmem:[#allocation5 + $0x108] ss:$16 sps:$4 sm:$0xff]   ;;  %v2602_v17 = vld [vmem:[#allocation5 + $0x124] ss:$16 sps:$4 sm:$0xff]  }
  0xde   :  { %883 = vmatpush1.bf16.msra.mxu0 %v2522_v19  ;;  %965 = vmatpush1.bf16.msra.mxu1 %v2525_v20  ;;  %v2600_v19 = vld [vmem:[#allocation5 + $0x120] ss:$16 sps:$4 sm:$0xff]   ;;  %v2603_v20 = vld [vmem:[#allocation5 + $0x128] ss:$16 sps:$4 sm:$0xff]  }
  0xdf   :  { %884 = vmatprep.subr.bf16.mxu0 %v2530_v14  ;;  %966 = vmatprep.subr.bf16.mxu1 %v2533_v24  ;;  %v2611_v14 = vld [vmem:[#allocation5 + $0x14c] ss:$16 sps:$4 sm:$0xff]   ;;  %v2606_v24 = vld [vmem:[#allocation5 + $0x140] ss:$16 sps:$4 sm:$0xff]  }
  0xe2   :  { %885 = vmatpush1.bf16.msra.mxu0 %v2528_v26  ;;  %967 = vmatpush1.bf16.msra.mxu1 %v2531_v27  ;;  %v2614_v26 = vld [vmem:[#allocation5 + $0x164] ss:$16 sps:$4 sm:$0xff]   ;;  %v2617_v27 = vld [vmem:[#allocation5 + $0x16c] ss:$16 sps:$4 sm:$0xff]  }
  0xe3   :  { %886 = vmatprep.subr.bf16.mxu0 %v2536_v30  ;;  %968 = vmatprep.subr.bf16.mxu1 %v2539_v31  ;;  %v2620_v30 = vld [vmem:[#allocation5 + $0x184] ss:$16 sps:$4 sm:$0xff]   ;;  %v2623_v31 = vld [vmem:[#allocation5 + $0x18c] ss:$16 sps:$4 sm:$0xff]  }
  0xe6   :  { %887 = vmatpush1.bf16.msra.mxu0 %v2534_v32  ;;  %969 = vmatpush1.bf16.msra.mxu1 %v2537_v33  ;;  %v2618_v32 = vld [vmem:[#allocation5 + $0x180] ss:$16 sps:$4 sm:$0xff]   ;;  %v2621_v33 = vld [vmem:[#allocation5 + $0x188] ss:$16 sps:$4 sm:$0xff]  }
  0xe7   :  { %888 = vmatprep.subr.bf16.mxu0 %v2542_v22  ;;  %970 = vmatprep.subr.bf16.mxu1 %v2545_v35  ;;  %v2629_v22 = vld [vmem:[#allocation5 + $0x1ac] ss:$16 sps:$4 sm:$0xff]   ;;  %v2624_v35 = vld [vmem:[#allocation5 + $0x1a0] ss:$16 sps:$4 sm:$0xff]  }
  0xea   :  { %889 = vmatpush1.bf16.msra.mxu0 %v2540_v36  ;;  %971 = vmatpush1.bf16.msra.mxu1 %v2543_v37  ;;  %v2627_v36 = vld [vmem:[#allocation5 + $0x1a8] ss:$16 sps:$4 sm:$0xff]   ;;  %v2632_v37 = vld [vmem:[#allocation5 + $0x1c4] ss:$16 sps:$4 sm:$0xff]  }
  0xeb   :  { %1628 = vmatprep.subr.bf16.mxu0 %v2548_v38  ;;  %1710 = vmatprep.subr.bf16.mxu1 %v2551_v39  ;;  %v2630_v38 = vld [vmem:[#allocation5 + $0x1c0] ss:$16 sps:$4 sm:$0xff]   ;;  %v2633_v39 = vld [vmem:[#allocation5 + $0x1c8] ss:$16 sps:$4 sm:$0xff]  }
  0xed   :  { %905 = vmatmul.mubr.bf16.vlgmr.msra.gmra.mrb[0].mxu0 %v203_v42  ;;  %987 = vmatmul.mubr.bf16.vlgmr.msra.gmra.mrb[0].mxu1 %v203_v42  ;;  %v2636_v42 = vld [vmem:[#allocation5 + $0x1e0] ss:$16 sps:$4 sm:$0xff]  }
  0xee   :  { %1629 = vmatpush1.bf16.msra.mxu0 %v2546_v40  ;;  %1711 = vmatpush1.bf16.msra.mxu1 %v2549_v41  ;;  %v2638_v40 = vld [vmem:[#allocation5 + $0x1e4] ss:$16 sps:$4 sm:$0xff]   ;;  %v2641_v41 = vld [vmem:[#allocation5 + $0x1ec] ss:$16 sps:$4 sm:$0xff]  }
  0xef   :  { %1630 = vmatprep.subr.bf16.mxu0 %v2554_v43  ;;  %1712 = vmatprep.subr.bf16.mxu1 %v2557_v44  ;;  %v2639_v43 = vld [vmem:[#allocation5 + $0x1e8] ss:$16 sps:$4 sm:$0xff]   ;;  %v2644_v44 = vld [vmem:[#allocation5 + $0x204] ss:$16 sps:$4 sm:$0xff]  }
  0xf2   :  { %1631 = vmatpush1.bf16.msra.mxu0 %v2552_v45  ;;  %1713 = vmatpush1.bf16.msra.mxu1 %v2555_v46  ;;  %v2647_v45 = vld [vmem:[#allocation5 + $0x20c] ss:$16 sps:$4 sm:$0xff]   ;;  %v2995_v46 = vld [vmem:[%s3046_s4] sm:$0xf] }
  0xf3   :  { %1632 = vmatprep.subr.bf16.mxu0 %v2560_v47  ;;  %1714 = vmatprep.subr.bf16.mxu1 %v2563_v48  ;;  %v310_v47 = vrot.slane %v2995_v46, %v2925_v8  ;;  %v314_v48 = vrot.slane %v2995_v46, %v2932_v11 }
  0xf6   :  { %1633 = vmatpush1.bf16.msra.mxu0 %v2558_v49  ;;  %1715 = vmatpush1.bf16.msra.mxu1 %v2561_v50  ;;  %v322_v49 = vrot.slane %v2995_v46, %v2935_v12 }
  0xf7   :  { %1634 = vmatprep.subr.bf16.mxu0 %v2566_v51  ;;  %1716 = vmatprep.subr.bf16.mxu1 %v2569_v52 }
  0xfa   :  { %1635 = vmatpush1.bf16.msra.mxu0 %v2564_v53  ;;  %1717 = vmatpush1.bf16.msra.mxu1 %v2567_v54 }
  0xfb   :  { %1636 = vmatprep.subr.bf16.mxu0 %v2572_v55  ;;  %1718 = vmatprep.subr.bf16.mxu1 %v2575_v56 }
  0xfe   :  { %1637 = vmatpush1.bf16.msra.mxu0 %v2570_v57  ;;  %1719 = vmatpush1.bf16.msra.mxu1 %v2573_v58 }
  0xff   :  { %1638 = vmatprep.subr.bf16.mxu0 %v2578_v59  ;;  %1720 = vmatprep.subr.bf16.mxu1 %v2581_v60 }
 0x102   :  { %1639 = vmatpush1.bf16.msra.mxu0 %v2576_v61  ;;  %1721 = vmatpush1.bf16.msra.mxu1 %v2579_v62 }
 0x103   :  { %1640 = vmatprep.subr.bf16.mxu0 %v2584_v63  ;;  %1722 = vmatprep.subr.bf16.mxu1 %v2587_v1 }
 0x106   :  { %1641 = vmatpush1.bf16.msra.mxu0 %v2582_v2  ;;  %1723 = vmatpush1.bf16.msra.mxu1 %v2585_v3  ;;  %v2642_v2 = vld [vmem:[#allocation5 + $0x200] ss:$16 sps:$4 sm:$0xff]   ;;  %v2645_v3 = vld [vmem:[#allocation5 + $0x208] ss:$16 sps:$4 sm:$0xff]  }
 0x107   :  { %1642 = vmatprep.subr.bf16.mxu0 %v2590_v4  ;;  %1724 = vmatprep.subr.bf16.mxu1 %v2593_v5  ;;  %v2650_v5 = vld [vmem:[#allocation5 + $0x224] ss:$16 sps:$4 sm:$0xff]  }
 0x10a   :  { %1643 = vmatpush1.bf16.msra.mxu0 %v2588_v6  ;;  %1725 = vmatpush1.bf16.msra.mxu1 %v2591_v10  ;;  %v2653_v6 = vld [vmem:[#allocation5 + $0x22c] ss:$16 sps:$4 sm:$0xff]  }
 0x10b   :  { %1644 = vmatprep.subr.bf16.mxu0 %v2596_v13  ;;  %1726 = vmatprep.subr.bf16.mxu1 %v2599_v15  ;;  %v2648_v13 = vld [vmem:[#allocation5 + $0x220] ss:$16 sps:$4 sm:$0xff]   ;;  %v2651_v15 = vld [vmem:[#allocation5 + $0x228] ss:$16 sps:$4 sm:$0xff]  }
 0x10e   :  { %1645 = vmatpush1.bf16.msra.mxu0 %v2594_v16  ;;  %1727 = vmatpush1.bf16.msra.mxu1 %v2597_v7  ;;  %v2656_v16 = vld [vmem:[#allocation5 + $0x244] ss:$16 sps:$4 sm:$0xff]   ;;  %v2659_v7 = vld [vmem:[#allocation5 + $0x24c] ss:$16 sps:$4 sm:$0xff]  }
 0x10f   :  { %1646 = vmatprep.subr.bf16.mxu0 %v2602_v17  ;;  %1728 = vmatprep.subr.bf16.mxu1 %v2605_v18  ;;  %v2654_v17 = vld [vmem:[#allocation5 + $0x240] ss:$16 sps:$4 sm:$0xff]   ;;  %v2657_v18 = vld [vmem:[#allocation5 + $0x248] ss:$16 sps:$4 sm:$0xff]  }
 0x112   :  { %1647 = vmatpush1.bf16.msra.mxu0 %v2600_v19  ;;  %1729 = vmatpush1.bf16.msra.mxu1 %v2603_v20  ;;  %v2662_v19 = vld [vmem:[#allocation5 + $0x264] ss:$16 sps:$4 sm:$0xff]   ;;  %v2665_v20 = vld [vmem:[#allocation5 + $0x26c] ss:$16 sps:$4 sm:$0xff]  }
 0x113   :  { %1648 = vmatprep.subr.bf16.mxu0 %v2608_v23  ;;  %1730 = vmatprep.subr.bf16.mxu1 %v2611_v14  ;;  %v2660_v23 = vld [vmem:[#allocation5 + $0x260] ss:$16 sps:$4 sm:$0xff]   ;;  %v2663_v14 = vld [vmem:[#allocation5 + $0x268] ss:$16 sps:$4 sm:$0xff]  }
 0x116   :  { %1649 = vmatpush1.bf16.msra.mxu0 %v2606_v24  ;;  %1731 = vmatpush1.bf16.msra.mxu1 %v2609_v25  ;;  %v2668_v24 = vld [vmem:[#allocation5 + $0x284] ss:$16 sps:$4 sm:$0xff]   ;;  %v2671_v25 = vld [vmem:[#allocation5 + $0x28c] ss:$16 sps:$4 sm:$0xff]  }
 0x117   :  { %1650 = vmatprep.subr.bf16.mxu0 %v2614_v26  ;;  %1732 = vmatprep.subr.bf16.mxu1 %v2617_v27  ;;  %v2666_v26 = vld [vmem:[#allocation5 + $0x280] ss:$16 sps:$4 sm:$0xff]   ;;  %v2669_v27 = vld [vmem:[#allocation5 + $0x288] ss:$16 sps:$4 sm:$0xff]  }
 0x11a   :  { %1651 = vmatpush1.bf16.msra.mxu0 %v2612_v28  ;;  %1733 = vmatpush1.bf16.msra.mxu1 %v2615_v29  ;;  %v2674_v28 = vld [vmem:[#allocation5 + $0x2a4] ss:$16 sps:$4 sm:$0xff]   ;;  %v2677_v29 = vld [vmem:[#allocation5 + $0x2ac] ss:$16 sps:$4 sm:$0xff]  }
 0x11b   :  { %1652 = vmatprep.subr.bf16.mxu0 %v2620_v30  ;;  %1734 = vmatprep.subr.bf16.mxu1 %v2623_v31  ;;  %v2672_v30 = vld [vmem:[#allocation5 + $0x2a0] ss:$16 sps:$4 sm:$0xff]   ;;  %v2675_v31 = vld [vmem:[#allocation5 + $0x2a8] ss:$16 sps:$4 sm:$0xff]  }
 0x11e   :  { %1653 = vmatpush1.bf16.msra.mxu0 %v2618_v32  ;;  %1735 = vmatpush1.bf16.msra.mxu1 %v2621_v33  ;;  %v2680_v32 = vld [vmem:[#allocation5 + $0x2c4] ss:$16 sps:$4 sm:$0xff]   ;;  %v2683_v33 = vld [vmem:[#allocation5 + $0x2cc] ss:$16 sps:$4 sm:$0xff]  }
 0x11f   :  { %1654 = vmatprep.subr.bf16.mxu0 %v2626_v34  ;;  %1736 = vmatprep.subr.bf16.mxu1 %v2629_v22  ;;  %v2678_v34 = vld [vmem:[#allocation5 + $0x2c0] ss:$16 sps:$4 sm:$0xff]   ;;  %v2681_v22 = vld [vmem:[#allocation5 + $0x2c8] ss:$16 sps:$4 sm:$0xff]  }
 0x122   :  { %1655 = vmatpush1.bf16.msra.mxu0 %v2624_v35  ;;  %1737 = vmatpush1.bf16.msra.mxu1 %v2627_v36  ;;  %v318_v35 = vrot.slane %v2995_v46, %v2928_v9  ;;  %v2686_v36 = vld [vmem:[#allocation5 + $0x2e4] ss:$16 sps:$4 sm:$0xff]  }
 0x123   :  { %1656 = vmatprep.subr.bf16.mxu0 %v2632_v37  ;;  %1738 = vmatprep.subr.bf16.mxu1 %v2635_v21  ;;  %v2689_v37 = vld [vmem:[#allocation5 + $0x2ec] ss:$16 sps:$4 sm:$0xff]   ;;  %v2684_v21 = vld [vmem:[#allocation5 + $0x2e0] ss:$16 sps:$4 sm:$0xff]  }
 0x124   :  { %v2696_v46 = vld [vmem:[#allocation7 + $0x80] sm:$0xff]  }
 0x126   :  { %1657 = vmatpush1.bf16.msra.mxu0 %v2630_v38  ;;  %1739 = vmatpush1.bf16.msra.mxu1 %v2633_v39  ;;  %v2687_v38 = vld [vmem:[#allocation5 + $0x2e8] ss:$16 sps:$4 sm:$0xff]  }
 0x127   :  { %1658 = vmatprep.subr.bf16.mxu0 %v2638_v40  ;;  %1740 = vmatprep.subr.bf16.mxu1 %v2641_v41  ;;  %v2692_v40 = vld [vmem:[#allocation5 + $0x304] ss:$16 sps:$4 sm:$0xff]   ;;  %v2695_v41 = vld [vmem:[#allocation5 + $0x30c] ss:$16 sps:$4 sm:$0xff]  }
 0x12a   :  { %1659 = vmatpush1.bf16.msra.mxu0 %v2636_v42  ;;  %1741 = vmatpush1.bf16.msra.mxu1 %v2639_v43  ;;  %v2690_v42 = vld [vmem:[#allocation5 + $0x300] ss:$16 sps:$4 sm:$0xff]   ;;  %v2693_v43 = vld [vmem:[#allocation5 + $0x308] ss:$16 sps:$4 sm:$0xff]  }
 0x12b   :  { %1669 = vmatprep.subr.bf16.mxu0 %v2644_v44  ;;  %1751 = vmatprep.subr.bf16.mxu1 %v2647_v45  ;;  %v2697_v45 = vld [vmem:[#allocation7 + $0x40] sm:$0xff]  }
 0x1c0   :  { %v906_v50 = vpop.f32.mrb[0].mxu0  ;;  %v3003_v51 = vpop.f32.mrb[0].mxu1 }
 0x1c1   :  { %v2360_v52 = vadd.f32 %v906_v50, %v310_v47  ;;  %v908_v53 = vpop.f32.mrb[1].mxu0  ;;  %v990_v54 = vpop.f32.mrb[1].mxu1  ;;  %v2362_v39 = vadd.f32 %v3003_v51, %v318_v35  ;;  %v2698_v47 = vld [vmem:[#allocation7] sm:$0xff]   ;;  %v2699_v50 = vld [vmem:[#allocation7 + $0x88] sm:$0xff]   ;;  %v2311_v35 = vld [vmem:[%s3050_s8] ss:$0 sm:$0xff] }
 0x1c2   :  { %v2361_v55 = vadd.f32 %v908_v53, %v314_v48  ;;  %v2363_v56 = vadd.f32 %v990_v54, %v322_v49  ;;  %v910_v57 = vpop.f32.mrb[2].mxu0  ;;  %v992_v58 = vpop.f32.mrb[2].mxu1  ;;  %v2700_v49 = vld [vmem:[#allocation7 + $0x48] sm:$0xff]   ;;  %v2702_v53 = vld [vmem:[#allocation7 + $0x90] sm:$0xff]  }
 0x1c3   :  { %v995_v59 = vmax.f32 %v2360_v52, 0.0  ;;  %v911_v60 = vpop.f32.mrb[3].mxu0  ;;  %v993_v61 = vpop.f32.mrb[3].mxu1  ;;  %v997_v44 = vmax.f32 %v2362_v39, 0.0  ;;  %v2701_v51 = vld [vmem:[#allocation7 + $0x8] sm:$0xff]   ;;  %v2703_v52 = vld [vmem:[#allocation7 + $0x50] sm:$0xff]  }
 0x1c4   :  { %v996_v62 = vmax.f32 %v2361_v55, 0.0  ;;  %v998_v63 = vmax.f32 %v2363_v56, 0.0  ;;  %v2704_v54 = vld [vmem:[#allocation7 + $0x10] sm:$0xff]   ;;  %v2706_v55 = vld [vmem:[#allocation7 + $0x58] sm:$0xff]   ;;  %v2709_v58 = vld [vmem:[#allocation7 + $0x60] sm:$0xff]  }
 0x1c5   :  { %v999_v4 = vpack.c.bf16 %v995_v59, %v995_v59  ;;  %v1001_v48 = vpack.c.bf16 %v997_v44, %v997_v44  ;;  %v2705_v56 = vld [vmem:[#allocation7 + $0x98] sm:$0xff]   ;;  %v2708_v59 = vld [vmem:[#allocation7 + $0xa0] sm:$0xff]   ;;  %v2712_v61 = vld [vmem:[#allocation7 + $0x68] sm:$0xff]  }
 0x1c6   :  { %v1000_v1 = vpack.c.bf16 %v996_v62, %v996_v62  ;;  %v1002_v10 = vpack.c.bf16 %v998_v63, %v998_v63  ;;  %v2707_v57 = vld [vmem:[#allocation7 + $0x18] sm:$0xff]   ;;  %v2710_v60 = vld [vmem:[#allocation7 + $0x20] sm:$0xff]   ;;  %v2711_v62 = vld [vmem:[#allocation7 + $0xa8] sm:$0xff]  }
 0x1c7   :  { %v2713_v63 = vld [vmem:[#allocation7 + $0x28] sm:$0xff]  }
 0x1c8   :  { %1660 = vmatprep.mubr.bf16.mxu0 %v1000_v1  ;;  %1742 = vmatprep.mubr.bf16.mxu1 %v1000_v1  ;;  %v2714_v1 = vld [vmem:[#allocation7 + $0xb0] sm:$0xff]  }
 0x1c9   :  { %1661 = vmatmul.mubr.bf16.vlgmr.msra.gmra.mrb[4].mxu0 %v999_v4  ;;  %1743 = vmatmul.mubr.bf16.vlgmr.msra.gmra.mrb[4].mxu1 %v999_v4  ;;  %v2717_v4 = vld [vmem:[#allocation7 + $0xb8] sm:$0xff]  }
 0x1ca   :  { %1670 = vmatpush1.bf16.msra.mxu0 %v2642_v2  ;;  %1752 = vmatpush1.bf16.msra.mxu1 %v2645_v3  ;;  %v2715_v2 = vld [vmem:[#allocation7 + $0x70] sm:$0xff]  }
 0x1cb   :  { %2309 = vmatprep.mubr.msk.bf16.mxu0 %vm827_vm0, %v1002_v10  ;;  %2310 = vmatprep.mubr.msk.bf16.mxu1 %vm827_vm0, %v1002_v10  ;;  %v2716_v3 = vld [vmem:[#allocation7 + $0x30] sm:$0xff]   ;;  %v2720_v10 = vld [vmem:[#allocation7 + $0xc0] sm:$0xff]  }
 0x1cc   :  { %1671 = vmatprep.subr.bf16.mxu0 %v2650_v5  ;;  %1753 = vmatprep.subr.bf16.mxu1 %v2653_v6  ;;  %v2718_v5 = vld [vmem:[#allocation7 + $0x78] sm:$0xff]  }
 0x1cd   :  { %v2719_v6 = vld [vmem:[#allocation7 + $0x38] sm:$0xff]  }
 0x1ce   :  { %1672 = vmatpush1.bf16.msra.mxu0 %v2648_v13  ;;  %1754 = vmatpush1.bf16.msra.mxu1 %v2651_v15  ;;  %v1103_v13 = vld [vmem:[%s3048_s6] sm:$0xf] }
 0x1cf   :  { %1673 = vmatprep.subr.bf16.mxu0 %v2656_v16  ;;  %1755 = vmatprep.subr.bf16.mxu1 %v2659_v7  ;;  %v1108_v15 = vrot.slane %v1103_v13, %v2925_v8  ;;  %v1116_v16 = vrot.slane %v1103_v13, %v2928_v9  ;;  %v1112_v7 = vrot.slane %v1103_v13, %v2932_v11 }
 0x1d2   :  { %1674 = vmatpush1.bf16.msra.mxu0 %v2654_v17  ;;  %1756 = vmatpush1.bf16.msra.mxu1 %v2657_v18  ;;  %v1120_v17 = vrot.slane %v1103_v13, %v2935_v12 }
 0x1d3   :  { %1675 = vmatprep.subr.bf16.mxu0 %v2662_v19  ;;  %1757 = vmatprep.subr.bf16.mxu1 %v2665_v20 }
 0x1d6   :  { %1676 = vmatpush1.bf16.msra.mxu0 %v2660_v23  ;;  %1758 = vmatpush1.bf16.msra.mxu1 %v2663_v14 }
 0x1d7   :  { %1677 = vmatprep.subr.bf16.mxu0 %v2668_v24  ;;  %1759 = vmatprep.subr.bf16.mxu1 %v2671_v25 }
 0x1da   :  { %1678 = vmatpush1.bf16.msra.mxu0 %v2666_v26  ;;  %1760 = vmatpush1.bf16.msra.mxu1 %v2669_v27 }
 0x1db   :  { %1679 = vmatprep.subr.bf16.mxu0 %v2674_v28  ;;  %1761 = vmatprep.subr.bf16.mxu1 %v2677_v29 }
 0x1de   :  { %1680 = vmatpush1.bf16.msra.mxu0 %v2672_v30  ;;  %1762 = vmatpush1.bf16.msra.mxu1 %v2675_v31 }
 0x1df   :  { %1681 = vmatprep.subr.bf16.mxu0 %v2680_v32  ;;  %1763 = vmatprep.subr.bf16.mxu1 %v2683_v33 }
 0x1e2   :  { %1682 = vmatpush1.bf16.msra.mxu0 %v2678_v34  ;;  %1764 = vmatpush1.bf16.msra.mxu1 %v2681_v22 }
 0x1e3   :  { %1683 = vmatprep.subr.bf16.mxu0 %v2686_v36  ;;  %1765 = vmatprep.subr.bf16.mxu1 %v2689_v37 }
 0x1e6   :  { %1684 = vmatpush1.bf16.msra.mxu0 %v2684_v21  ;;  %1766 = vmatpush1.bf16.msra.mxu1 %v2687_v38 }
 0x1e7   :  { %1685 = vmatprep.subr.bf16.mxu0 %v2692_v40  ;;  %1767 = vmatprep.subr.bf16.mxu1 %v2695_v41 }
 0x1ea   :  { %1686 = vmatpush1.bf16.msra.mxu0 %v2690_v42  ;;  %1768 = vmatpush1.bf16.msra.mxu1 %v2693_v43 }
 0x1eb   :  { %2050 = vmatprep.subr.bf16.mxu1 %v2822_v0  ;;  %2338 = vmatprep.subr.bf16.mxu0 %v2697_v45 }
 0x1ed   :  { %1702 = vmatmul.mubr.bf16.vlgmr.msra.gmra.mrb[4].mxu0 %v1001_v48  ;;  %1784 = vmatmul.mubr.bf16.vlgmr.msra.gmra.mrb[4].mxu1 %v1001_v48 }
 0x1ee   :  { %2051 = vmatpush1.bf16.msra.mxu1 %v2696_v46  ;;  %2339 = vmatpush3.bf16.msra.mxu0 %v2698_v47 }
 0x1ef   :  { %2052 = vmatprep.subr.bf16.mxu1 %v2822_v0  ;;  %2340 = vmatprep.subr.bf16.mxu0 %v2700_v49 }
 0x1f2   :  { %2053 = vmatpush1.bf16.msra.mxu1 %v2699_v50  ;;  %2341 = vmatpush3.bf16.msra.mxu0 %v2701_v51 }
 0x1f3   :  { %2054 = vmatprep.subr.bf16.mxu1 %v2822_v0  ;;  %2342 = vmatprep.subr.bf16.mxu0 %v2703_v52 }
 0x1f6   :  { %2055 = vmatpush1.bf16.msra.mxu1 %v2702_v53  ;;  %2343 = vmatpush3.bf16.msra.mxu0 %v2704_v54 }
 0x1f7   :  { %2056 = vmatprep.subr.bf16.mxu1 %v2822_v0  ;;  %2344 = vmatprep.subr.bf16.mxu0 %v2706_v55 }
 0x1fa   :  { %2057 = vmatpush1.bf16.msra.mxu1 %v2705_v56  ;;  %2345 = vmatpush3.bf16.msra.mxu0 %v2707_v57 }
 0x1fb   :  { %2058 = vmatprep.subr.bf16.mxu1 %v2822_v0  ;;  %2346 = vmatprep.subr.bf16.mxu0 %v2709_v58 }
 0x1fe   :  { %2059 = vmatpush1.bf16.msra.mxu1 %v2708_v59  ;;  %2347 = vmatpush3.bf16.msra.mxu0 %v2710_v60 }
 0x1ff   :  { %2060 = vmatprep.subr.bf16.mxu1 %v2822_v0  ;;  %2348 = vmatprep.subr.bf16.mxu0 %v2712_v61 }
 0x202   :  { %2061 = vmatpush1.bf16.msra.mxu1 %v2711_v62  ;;  %2349 = vmatpush3.bf16.msra.mxu0 %v2713_v63 }
 0x203   :  { %2062 = vmatprep.subr.bf16.mxu1 %v2822_v0  ;;  %2350 = vmatprep.subr.bf16.mxu0 %v2715_v2 }
 0x206   :  { %2063 = vmatpush1.bf16.msra.mxu1 %v2714_v1  ;;  %2351 = vmatpush3.bf16.msra.mxu0 %v2716_v3 }
 0x207   :  { %2064 = vmatprep.subr.bf16.mxu1 %v2822_v0  ;;  %2352 = vmatprep.subr.bf16.mxu0 %v2718_v5 }
 0x20a   :  { %2065 = vmatpush1.bf16.msra.mxu1 %v2717_v4  ;;  %2353 = vmatpush3.bf16.msra.mxu0 %v2719_v6 }
 0x20b   :  { %2066 = vmatprep.subr.bf16.mxu1 %v2822_v0 }
 0x20e   :  { %2067 = vmatpush1.bf16.msra.mxu1 %v2720_v10 }
 0x2c0   :  { %v1703_v18 = vpop.f32.mrb[4].mxu0  ;;  %v1785_v19 = vpop.f32.mrb[4].mxu1 }
 0x2c1   :  { %v2364_v0 = vadd.f32 %v1703_v18, %v1108_v15  ;;  %v2366_v20 = vadd.f32 %v1785_v19, %v1116_v16  ;;  %v1705_v23 = vpop.f32.mrb[5].mxu0  ;;  %v1787_v14 = vpop.f32.mrb[5].mxu1 }
 0x2c2   :  { %v2365_v24 = vadd.f32 %v1705_v23, %v1112_v7  ;;  %v2367_v25 = vadd.f32 %v1787_v14, %v1120_v17  ;;  %v1707_v26 = vpop.f32.mrb[6].mxu0  ;;  %v1789_v27 = vpop.f32.mrb[6].mxu1 }
 0x2c3   :  { %v1792_v28 = vmax.f32 %v2364_v0, 0.0  ;;  %v1794_v29 = vmax.f32 %v2366_v20, 0.0  ;;  %v1708_v30 = vpop.f32.mrb[7].mxu0  ;;  %v1790_v8 = vpop.f32.mrb[7].mxu1 }
 0x2c4   :  { %v1793_v31 = vmax.f32 %v2365_v24, 0.0  ;;  %v1795_v9 = vmax.f32 %v2367_v25, 0.0 }
 0x2c5   :  { %v1796_v33 = vpack.c.bf16 %v1792_v28, %v1792_v28  ;;  %v1798_v12 = vpack.c.bf16 %v1794_v29, %v1794_v29 }
 0x2c6   :  { %v1797_v32 = vpack.c.bf16 %v1793_v31, %v1793_v31  ;;  %v1799_v11 = vpack.c.bf16 %v1795_v9, %v1795_v9 }
 0x2c8   :  { %2042 = vmatprep.mubr.bf16.mxu0 %v1797_v32  ;;  %2337 = vmatprep.mubr.msk.bf16.mxu1 %vm827_vm0, %v1799_v11 }
 0x2c9   :  { %2043 = vmatmul.mubr.bf16.vlgmr.msra.gmra.mrb[8].mxu0 %v1796_v33  ;;  %2083 = vmatmul.mubr.bf16.vlgmr.msra.gmra.mrb[8].mxu1 %v1798_v12 }
 0x39c   :  { %v2354_v34 = vpop.f32.mrb[8].mxu0  ;;  %v2084_v22 = vpop.f32.mrb[8].mxu1 }
 0x39d   :  { %v2355_v36 = vpop.f32.mrb[9].mxu0  ;;  %v2086_v37 = vpop.f32.mrb[9].mxu1 }
 0x39e   :  { %v2356_v21 = vadd.f32 %v2355_v36, %v2354_v34  ;;  %v2357_v38 = vpop.f32.mrb[10].mxu0  ;;  %v2087_v39 = vpop.f32.mrb[10].mxu1 }
 0x39f   :  { %v2358_v40 = vpop.f32.mrb[11].mxu0  ;;  %v2088_v41 = vpop.f32.mrb[11].mxu1 }
 0x3a0   :  { %v2045_v42 = vadd.f32 %v2356_v21, %v2311_v35 }
 0x3a2   :  { %v2085_v43 = vadd.f32 %v2084_v22, %v2045_v42 }
 0x3a4   :  { %2090 = vst [vmem:[#allocation8] sm:$0xff] %v2085_v43 }
 0x3a5   :  { %2798 = shalt.err (!%p2795_p0)
}
 0x3a6   :  { %s2799_s15 = scalar_lea.hbm %s3051_s9, 128 }
 0x3a7   :  { %p2800_p1 = scmp.ne.s32.totalorder %s3051_s9, %s2799_s15  ;;  %p2803_p2 = scmp.lt.u32.totalorder %s2799_s15, %s3051_s9 }
 0x3a9   :  { %p2805_p3 = pnand %p2803_p2, %p2800_p1 }
 0x3ab   :  { %2808 = shalt.err (!%p2805_p3)
}
 0x3ac   :  { %2100 = dma.vmem_to_hbm [thread:$0]  %s2098_s5, 128, %s3051_s9, [#allocation4]  }
 0x3ad   :  { %2813 = dma.done.wait [#allocation4], 128  }
 0x3ae   :  { %2814 = vsyncadd [#allocation4], 4294967168 }
 0x3af   :  { %2104 = vsyncpa [#allocation3], 1 }
 0x3b0   :  { %2105 = vsyncpa [#allocation6], 1 }
 0x3b1   :  { %2106 = vsyncpa [#allocation4], 1 }

</bundles_post_ra>
